<compile_context>
chip_gen: v5e
topology: v5e:2x2
jax: 0.10.0
libtpu: 0.0.40
codegen_flags: <defaults>
</compile_context>

<pallas_src>
import jax
import jax.numpy as jnp
from jax.experimental import pallas as pl
from jax.experimental.pallas import tpu as pltpu


def _round_up(x, m):
    return (x + m - 1) // m * m


def _pad2(w, rows, cols):
    return jnp.pad(w, ((0, rows - w.shape[0]), (0, cols - w.shape[1])))


def attention_kernel(lens_ref, q_ref, enc_ref, w_in_t_ref, w_out_c_t_ref,
                     w_out_q_t_ref, b_ref, o_ref):
    TB, QP, HP = q_ref.shape          # batch block, padded query len, padded hidden
    SP = enc_ref.shape[1]             # padded source len

    q3 = q_ref[...]                   # (TB, QP, HP)  mxu dtype
    enc3 = enc_ref[...]               # (TB, SP, HP)  mxu dtype

    # ---- linear_in (no bias): fold TB*QP into the matmul M dimension --------
    qf = q3.reshape(TB * QP, HP)
    qt = jnp.dot(qf, w_in_t_ref[...], preferred_element_type=jnp.float32)
    qt3 = qt.reshape(TB, QP, HP).astype(q3.dtype)

    # ---- attention scores: contract on H, enc in stored layout (no transpose)
    scores = jax.lax.dot_general(
        qt3, enc3, (((2,), (2,)), ((0,), (0,))),
        preferred_element_type=jnp.float32)                       # (TB, QP, SP)

    # ---- length mask: single broadcast compare + select (vectorized) --------
    lens_blk = lens_ref[...]                                      # (TB, 1, 1) i32
    s_ids = jax.lax.broadcasted_iota(jnp.int32, scores.shape, 2)
    scores = jnp.where(s_ids < lens_blk, scores, -1e30)           # finite: no NaN

    # ---- softmax over source dim; reciprocal on the (idle) EUP --------------
    m = jnp.max(scores, axis=-1, keepdims=True)
    e = jnp.exp(scores - m)
    denom = jnp.sum(e, axis=-1, keepdims=True)
    attn = e * pl.reciprocal(denom, approx=True)                  # (TB, QP, SP)

    # ---- context: attn @ enc -------------------------------------------------
    ctx = jax.lax.dot_general(
        attn.astype(enc3.dtype), enc3, (((2,), (1,)), ((0,), (0,))),
        preferred_element_type=jnp.float32)                       # (TB, QP, HP)

    # ---- linear_out(cat([c, q])) as two adjacent matmuls (MRB-friendly) ------
    cf = ctx.reshape(TB * QP, HP).astype(q3.dtype)
    out = (jnp.dot(cf, w_out_c_t_ref[...], preferred_element_type=jnp.float32)
           + jnp.dot(qf, w_out_q_t_ref[...], preferred_element_type=jnp.float32)
           + b_ref[...])                                          # (TB*QP, HP)

    o_ref[...] = jnp.tanh(out).reshape(TB, QP, HP).astype(o_ref.dtype)


def _default_vmem_limit_bytes():
    # 3/4 of the chip's physical VMEM: ~48 MiB on v7x, ~96 MiB on v5e/v6e.
    try:
        cap = int(pltpu.get_tpu_info().vmem_capacity_bytes)
    except Exception:
        cap = 128 * 1024 * 1024
    return max(32 * 1024 * 1024, min(cap * 3 // 4, 112 * 1024 * 1024))


def _default_batch_block(B):
    # Largest divisor of B that still leaves >= 2 grid steps (pipelining +
    # both v7x TensorCores busy). For B == 1 there is nothing to split.
    if B < 2:
        return B
    return max(d for d in range(1, B // 2 + 1) if B % d == 0)


def luong_attention(query, encoder_outputs, src_lengths, w_in, w_out, b_out,
                    *, batch_block=None, mxu_dtype=jnp.bfloat16,
                    return_padded=False):
    """query: (B,Q,H), encoder_outputs: (B,S,H), src_lengths: (B,) int.
    w_in: (H,H) [linear_in.weight], w_out: (H,2H) [linear_out.weight],
    b_out: (H,) [linear_out.bias].  mxu_dtype=bfloat16 (default) halves MXU /
    DMA cost; accumulation and all elementwise work stay f32."""
    B, Q, H = query.shape
    S = encoder_outputs.shape[1]
    out_dtype = query.dtype

    # dtype- and size-aware padded extents
    sublane = 8 if jnp.dtype(mxu_dtype).itemsize == 4 else 16
    HP = _round_up(H, 128)                                   # lane dim of matmuls
    SP = _round_up(S, 128) if S >= 128 else _round_up(S, sublane)
    QP = _round_up(Q, sublane)

    TB = _default_batch_block(B) if batch_block is None else batch_block
    assert B % TB == 0, "batch_block must divide the batch size"
    n_blk = B // TB

    # host-side: pad to dense shapes, pre-transpose weights (no in-kernel
    # transposes / relayouts).
    q_p = jnp.pad(query, ((0, 0), (0, QP - Q), (0, HP - H))).astype(mxu_dtype)
    e_p = jnp.pad(encoder_outputs,
                  ((0, 0), (0, SP - S), (0, HP - H))).astype(mxu_dtype)
    w_in_t = _pad2(w_in, HP, HP).T.astype(mxu_dtype)
    w_out_c_t = _pad2(w_out[:, :H], HP, HP).T.astype(mxu_dtype)   # context half
    w_out_q_t = _pad2(w_out[:, H:], HP, HP).T.astype(mxu_dtype)   # query half
    b_p = jnp.pad(b_out, (0, HP - H)).reshape(1, HP).astype(jnp.float32)
    lens3 = src_lengths.astype(jnp.int32).reshape(B, 1, 1)

    mxu_bytes = jnp.dtype(mxu_dtype).itemsize
    flops = 2 * B * QP * (3 * HP * HP + 2 * SP * HP)
    transcendentals = B * QP * (SP + HP + 1)          # exp + tanh + reciprocal
    bytes_accessed = ((B * QP * HP + B * SP * HP + 3 * HP * HP) * mxu_bytes
                      + HP * 4 + B * 4 + B * QP * HP * 4)

    grid_spec = pltpu.PrefetchScalarGridSpec(
        num_scalar_prefetch=0,
        grid=(n_blk,),
        in_specs=[
            pl.BlockSpec((TB, 1, 1), lambda i: (i, 0, 0)),       # src_lengths
            pl.BlockSpec((TB, QP, HP), lambda i: (i, 0, 0)),     # query
            pl.BlockSpec((TB, SP, HP), lambda i: (i, 0, 0)),     # encoder
            # Constant-index weight tiles stay resident in VMEM.
            pl.BlockSpec((HP, HP), lambda i: (0, 0)),            # w_in^T
            pl.BlockSpec((HP, HP), lambda i: (0, 0)),            # w_out_c^T
            pl.BlockSpec((HP, HP), lambda i: (0, 0)),            # w_out_q^T
            pl.BlockSpec((1, HP),  lambda i: (0, 0)),            # bias
        ],
        out_specs=pl.BlockSpec((TB, QP, HP), lambda i: (i, 0, 0)),
    )

    out_full = pl.pallas_call(
        attention_kernel,
        out_shape=jax.ShapeDtypeStruct((B, QP, HP), out_dtype),
        grid_spec=grid_spec,
        compiler_params=pltpu.CompilerParams(
            dimension_semantics=("parallel",),
            vmem_limit_bytes=_default_vmem_limit_bytes()),
        cost_estimate=pl.CostEstimate(
            flops=flops, transcendentals=transcendentals,
            bytes_accessed=bytes_accessed),
    )(lens3, q_p, e_p, w_in_t, w_out_c_t, w_out_q_t, b_p)

    if return_padded:
        return out_full          # (B, QP, HP); skips an extra HBM pass
    return out_full[:, :Q, :H]


def reference_attention(query, encoder_outputs, src_lengths, w_in, w_out, b_out):
    """Pure-JAX f32 reference for correctness checking."""
    S = encoder_outputs.shape[1]
    qt = jnp.einsum("bqh,kh->bqk", query, w_in)
    scores = jnp.einsum("bqh,bsh->bqs", qt, encoder_outputs)
    mask = jnp.arange(S)[None, None, :] < src_lengths[:, None, None]
    scores = jnp.where(mask, scores, -jnp.inf)
    attn = jax.nn.softmax(scores, axis=-1)
    c = jnp.einsum("bqs,bsh->bqh", attn, encoder_outputs)
    cat = jnp.concatenate([c, query], axis=-1)
    out = jnp.einsum("bqk,hk->bqh", cat, w_out) + b_out
    return jnp.tanh(out)


if __name__ == "__main__":
    B, Q, S, H = 2, 8, 16, 32
    key = jax.random.PRNGKey(0)
    k1, k2, k3, k4, k5 = jax.random.split(key, 5)

    query = jax.random.normal(k1, (B, Q, H), dtype=jnp.float32)
    encoder_outputs = jax.random.normal(k2, (B, S, H), dtype=jnp.float32)
    src_lengths = jnp.array([S, S - 5], dtype=jnp.int32)

    w_in = jax.random.normal(k3, (H, H), dtype=jnp.float32) * 0.1       # linear_in.weight
    w_out = jax.random.normal(k4, (H, 2 * H), dtype=jnp.float32) * 0.1  # linear_out.weight
    b_out = jax.random.normal(k5, (H,), dtype=jnp.float32) * 0.1        # linear_out.bias

    ref = reference_attention(query, encoder_outputs, src_lengths, w_in, w_out, b_out)

    # f32 MXU path (tolerance accounts for the EUP approximate reciprocal)
    out_f32 = jax.block_until_ready(
        luong_attention(query, encoder_outputs, src_lengths, w_in, w_out, b_out,
                        mxu_dtype=jnp.float32))
    assert out_f32.shape == (B, Q, H)
    assert jnp.allclose(out_f32, ref, atol=1e-2, rtol=1e-2), "f32 mismatch vs reference"

    # bf16 MXU path (default; f32 accumulation + f32 elementwise)
    out_bf16 = jax.block_until_ready(
        luong_attention(query, encoder_outputs, src_lengths, w_in, w_out, b_out,
                        mxu_dtype=jnp.bfloat16))
    assert out_bf16.shape == (B, Q, H)
    assert jnp.allclose(out_bf16, ref, atol=7e-2, rtol=7e-2), "bf16 mismatch vs reference"

    print("KERNEL_OK")
</pallas_src>

<mosaic_0001>
module attributes {stable_mosaic.version = 11 : i64} {
  func.func @attention_kernel(%arg0: i32, %arg1: memref<1x1x1xi32, #tpu.memory_space<vmem>>, %arg2: memref<1x8x128xf32, #tpu.memory_space<vmem>>, %arg3: memref<1x16x128xf32, #tpu.memory_space<vmem>>, %arg4: memref<128x128xf32, #tpu.memory_space<vmem>>, %arg5: memref<128x128xf32, #tpu.memory_space<vmem>>, %arg6: memref<128x128xf32, #tpu.memory_space<vmem>>, %arg7: memref<1x128xf32, #tpu.memory_space<vmem>>, %arg8: memref<1x8x128xf32, #tpu.memory_space<vmem>>) attributes {dimension_semantics = [#tpu.dimension_semantics<parallel>], iteration_bounds = array<i64: 2>, scalar_prefetch = 0 : i64, scratch_operands = 0 : i64, tpu.core_type = #tpu.core_type<tc>, window_params = [{transform_indices = @transform_0, window_bounds = array<i64: 1, 1, 1>}, {transform_indices = @transform_1, window_bounds = array<i64: 1, 8, 128>}, {transform_indices = @transform_2, window_bounds = array<i64: 1, 16, 128>}, {pipeline_mode = #tpu.pipeline_mode<synchronous>, transform_indices = @transform_3, window_bounds = array<i64: 128, 128>}, {pipeline_mode = #tpu.pipeline_mode<synchronous>, transform_indices = @transform_4, window_bounds = array<i64: 128, 128>}, {pipeline_mode = #tpu.pipeline_mode<synchronous>, transform_indices = @transform_5, window_bounds = array<i64: 128, 128>}, {pipeline_mode = #tpu.pipeline_mode<synchronous>, transform_indices = @transform_6, window_bounds = array<i64: 1, 128>}, {transform_indices = @transform_7, window_bounds = array<i64: 1, 8, 128>}]} {
    %c0 = arith.constant 0 : index
    %c0_0 = arith.constant 0 : index
    %c0_1 = arith.constant 0 : index
    %0 = vector.load %arg2[%c0, %c0_0, %c0_1] : memref<1x8x128xf32, #tpu.memory_space<vmem>>, vector<1x8x128xf32>
    %c0_2 = arith.constant 0 : index
    %c0_3 = arith.constant 0 : index
    %c0_4 = arith.constant 0 : index
    %1 = vector.load %arg3[%c0_2, %c0_3, %c0_4] : memref<1x16x128xf32, #tpu.memory_space<vmem>>, vector<1x16x128xf32>
    %2 = vector.shape_cast %0 : vector<1x8x128xf32> to vector<8x128xf32>
    %c0_5 = arith.constant 0 : index
    %c0_6 = arith.constant 0 : index
    %3 = vector.load %arg4[%c0_5, %c0_6] : memref<128x128xf32, #tpu.memory_space<vmem>>, vector<128x128xf32>
    %cst = arith.constant dense<0.000000e+00> : vector<8x128xf32>
    %4 = tpu.matmul %2, %3, %cst {dimension_numbers = #tpu.dot_dimension_numbers<[1], [0], [0], [1], [0, 0, 1, 1], [], []>} : vector<8x128xf32>, vector<128x128xf32>, vector<8x128xf32> -> vector<8x128xf32>
    %5 = vector.shape_cast %4 : vector<8x128xf32> to vector<1x8x128xf32>
    %cst_7 = arith.constant dense<0.000000e+00> : vector<1x8x16xf32>
    %6 = tpu.matmul %5, %1, %cst_7 {dimension_numbers = #tpu.dot_dimension_numbers<[2], [2], [1], [1], [0, 0, 0, 1, 1, 1], [0], [0]>} : vector<1x8x128xf32>, vector<1x16x128xf32>, vector<1x8x16xf32> -> vector<1x8x16xf32>
    %c0_8 = arith.constant 0 : index
    %c0_9 = arith.constant 0 : index
    %c0_10 = arith.constant 0 : index
    %7 = vector.load %arg1[%c0_8, %c0_9, %c0_10] : memref<1x1x1xi32, #tpu.memory_space<vmem>>, vector<1x1x1xi32>
    %8 = tpu.iota {dimensions = array<i32: 2>} : vector<1x8x16xi32>
    %9 = vector.broadcast %7 : vector<1x1x1xi32> to vector<1x8x16xi32>
    %10 = arith.cmpi slt, %8, %9 : vector<1x8x16xi32>
    %cst_11 = arith.constant -1.000000e+30 : f32
    %11 = vector.broadcast %cst_11 : f32 to vector<1x8x16xf32>
    %12 = arith.select %10, %6, %11 : vector<1x8x16xi1>, vector<1x8x16xf32>
    %cst_12 = arith.constant dense<0xFF800000> : vector<1x8xf32>
    %13 = vector.multi_reduction <maximumf>, %12, %cst_12 [2] : vector<1x8x16xf32> to vector<1x8xf32>
    %14 = vector.shape_cast %13 : vector<1x8xf32> to vector<1x8x1xf32>
    %15 = vector.broadcast %14 : vector<1x8x1xf32> to vector<1x8x16xf32>
    %16 = arith.subf %12, %15 : vector<1x8x16xf32>
    %17 = math.exp %16 : vector<1x8x16xf32>
    %cst_13 = arith.constant dense<0.000000e+00> : vector<1x8xf32>
    %18 = vector.multi_reduction <add>, %17, %cst_13 [2] : vector<1x8x16xf32> to vector<1x8xf32>
    %19 = vector.shape_cast %18 : vector<1x8xf32> to vector<1x8x1xf32>
    %20 = tpu.reciprocal %19 {approx = true} : vector<1x8x1xf32> -> vector<1x8x1xf32>
    %21 = vector.broadcast %20 : vector<1x8x1xf32> to vector<1x8x16xf32>
    %22 = arith.mulf %17, %21 : vector<1x8x16xf32>
    %cst_14 = arith.constant dense<0.000000e+00> : vector<1x8x128xf32>
    %23 = tpu.matmul %22, %1, %cst_14 {dimension_numbers = #tpu.dot_dimension_numbers<[2], [1], [1], [2], [0, 0, 0, 1, 1, 2], [0], [0]>} : vector<1x8x16xf32>, vector<1x16x128xf32>, vector<1x8x128xf32> -> vector<1x8x128xf32>
    %24 = vector.shape_cast %23 : vector<1x8x128xf32> to vector<8x128xf32>
    %c0_15 = arith.constant 0 : index
    %c0_16 = arith.constant 0 : index
    %25 = vector.load %arg5[%c0_15, %c0_16] : memref<128x128xf32, #tpu.memory_space<vmem>>, vector<128x128xf32>
    %cst_17 = arith.constant dense<0.000000e+00> : vector<8x128xf32>
    %26 = tpu.matmul %24, %25, %cst_17 {dimension_numbers = #tpu.dot_dimension_numbers<[1], [0], [0], [1], [0, 0, 1, 1], [], []>} : vector<8x128xf32>, vector<128x128xf32>, vector<8x128xf32> -> vector<8x128xf32>
    %c0_18 = arith.constant 0 : index
    %c0_19 = arith.constant 0 : index
    %27 = vector.load %arg6[%c0_18, %c0_19] : memref<128x128xf32, #tpu.memory_space<vmem>>, vector<128x128xf32>
    %cst_20 = arith.constant dense<0.000000e+00> : vector<8x128xf32>
    %28 = tpu.matmul %2, %27, %cst_20 {dimension_numbers = #tpu.dot_dimension_numbers<[1], [0], [0], [1], [0, 0, 1, 1], [], []>} : vector<8x128xf32>, vector<128x128xf32>, vector<8x128xf32> -> vector<8x128xf32>
    %29 = arith.addf %26, %28 : vector<8x128xf32>
    %c0_21 = arith.constant 0 : index
    %c0_22 = arith.constant 0 : index
    %30 = vector.load %arg7[%c0_21, %c0_22] : memref<1x128xf32, #tpu.memory_space<vmem>>, vector<1x128xf32>
    %31 = vector.broadcast %30 : vector<1x128xf32> to vector<8x128xf32>
    %32 = arith.addf %29, %31 : vector<8x128xf32>
    %33 = math.tanh %32 : vector<8x128xf32>
    %34 = vector.shape_cast %33 : vector<8x128xf32> to vector<1x8x128xf32>
    %c0_23 = arith.constant 0 : index
    %c0_24 = arith.constant 0 : index
    %c0_25 = arith.constant 0 : index
    %35 = vector.load %arg8[%c0_23, %c0_24, %c0_25] : memref<1x8x128xf32, #tpu.memory_space<vmem>>, vector<1x8x128xf32>
    tpu.vector_store %arg8[%c0_23, %c0_24, %c0_25], %34 {strides = array<i32>} : memref<1x8x128xf32, #tpu.memory_space<vmem>>, vector<1x8x128xf32>,
    return
  }
  func.func @transform_0(%arg0: i32) -> (i32, i32, i32) {
    %c0_i32 = arith.constant 0 : i32
    %c0_i32_0 = arith.constant 0 : i32
    %c0_i32_1 = arith.constant 0 : i32
    return %arg0, %c0_i32, %c0_i32_0 : i32, i32, i32
  }
  func.func @transform_1(%arg0: i32) -> (i32, i32, i32) {
    %c0_i32 = arith.constant 0 : i32
    %c0_i32_0 = arith.constant 0 : i32
    %c0_i32_1 = arith.constant 0 : i32
    return %arg0, %c0_i32, %c0_i32_0 : i32, i32, i32
  }
  func.func @transform_2(%arg0: i32) -> (i32, i32, i32) {
    %c0_i32 = arith.constant 0 : i32
    %c0_i32_0 = arith.constant 0 : i32
    %c0_i32_1 = arith.constant 0 : i32
    return %arg0, %c0_i32, %c0_i32_0 : i32, i32, i32
  }
  func.func @transform_3(%arg0: i32) -> (i32, i32) {
    %c0_i32 = arith.constant 0 : i32
    %c0_i32_0 = arith.constant 0 : i32
    %c0_i32_1 = arith.constant 0 : i32
    return %c0_i32, %c0_i32_0 : i32, i32
  }
  func.func @transform_4(%arg0: i32) -> (i32, i32) {
    %c0_i32 = arith.constant 0 : i32
    %c0_i32_0 = arith.constant 0 : i32
    %c0_i32_1 = arith.constant 0 : i32
    return %c0_i32, %c0_i32_0 : i32, i32
  }
  func.func @transform_5(%arg0: i32) -> (i32, i32) {
    %c0_i32 = arith.constant 0 : i32
    %c0_i32_0 = arith.constant 0 : i32
    %c0_i32_1 = arith.constant 0 : i32
    return %c0_i32, %c0_i32_0 : i32, i32
  }
  func.func @transform_6(%arg0: i32) -> (i32, i32) {
    %c0_i32 = arith.constant 0 : i32
    %c0_i32_0 = arith.constant 0 : i32
    %c0_i32_1 = arith.constant 0 : i32
    return %c0_i32, %c0_i32_0 : i32, i32
  }
  func.func @transform_7(%arg0: i32) -> (i32, i32, i32) {
    %c0_i32 = arith.constant 0 : i32
    %c0_i32_0 = arith.constant 0 : i32
    %c0_i32_1 = arith.constant 0 : i32
    return %arg0, %c0_i32, %c0_i32_0 : i32, i32, i32
  }
}

</mosaic_0001>

<bundles_post_ra>
// kernel: tpu_custom_call.1
= control target key start
LH: loop header
LB: loop body
LE: loop exit
PB: predicated region body
PF: predicated region fallthrough
CT: control target
= control target key end

     0   :  { %s1353_s0 = inlined_call_operand.vmem [shape: s32[2,1,1], index: 0, kind: input, shape index: {}]   ;;  %s1354_s1 = inlined_call_operand.hbm [shape: f32[2,8,128], index: 1, kind: input, shape index: {}]   ;;  %s1355_s2 = inlined_call_operand.hbm [shape: f32[2,16,128], index: 2, kind: input, shape index: {}]   ;;  %s1356_s3 = inlined_call_operand.hbm [shape: f32[128,128], index: 3, kind: input, shape index: {}]   ;;  %s1357_s4 = inlined_call_operand.hbm [shape: f32[128,128], index: 4, kind: input, shape index: {}]   ;;  %s1358_s5 = inlined_call_operand.hbm [shape: f32[128,128], index: 5, kind: input, shape index: {}]   ;;  %s1359_s6 = inlined_call_operand.vmem [shape: f32[1,128], index: 6, kind: input, shape index: {}]   ;;  %s1360_s7 = inlined_call_operand.hbm [shape: f32[2,8,128], index: 7, kind: output, shape index: {}]  }
   0x1   :  { %1364 = sst [smem:[#allocation19_spill]] %s1356_s3 }
   0x2   :  { %1365 = sst [smem:[#allocation20_spill]] %s1357_s4 }
   0x3   :  { %1366 = sst [smem:[#allocation21_spill]] %s1358_s5 }
   0x4   :  { %12 = vsyncpa [#allocation3], 0 }
   0x5   :  { %14 = vsyncpa [#allocation3 + $0x1], 0 }
   0x6   :  { %15 = vsyncpa [#allocation6], 0 }
   0x7   :  { %17 = vsyncpa [#allocation6 + $0x1], 0 }
   0x8   :  { %18 = vsyncpa [#allocation9], 0 }
   0x9   :  { %19 = vsyncpa [#allocation4], 0 }
   0xa   :  { %21 = vsyncpa [#allocation4 + $0x1], 0  ;;  %s1123_s24 = smov 0   ;;  %s1125_s25 = smov 0  }
   0xb   :  { %s1127_s26 = smov 0   ;;  %s1129_s27 = smov 0  }
   0xc LB: > { %1367 = sst [smem:[#allocation17_spill]] %s1071_s26  ;;  %s1147_s8 = sadd.s32 4294967295, %s1075_s27   ;;  %s1075_s27 = sphi %s1129_s27, %s1387_s27   ;;  %s1071_s26 = sphi %s1127_s26, %s1386_s26   ;;  %s1067_s25 = sphi %s1125_s25, %s1385_s25   ;;  %s1063_s24 = sphi %s1123_s24, %s1384_s24  }
   0xd   : > { %s1368_s3 = sld [smem:[#allocation19_spill]]  ;;  %p730_p0 = scmp.ge.s32.totalorder %s1075_s27, 1 }
   0xe   : > { %p74_p1 = scmp.eq.s32.totalorder %s1147_s8, 0  ;;  %p220_p2 = scmp.lt.s32.totalorder %s1075_s27, 3 }
   0xf   : > { %s1077_s10 = smov [#allocation7]   ;;  %s1370_s4 = sld [smem:[#allocation20_spill]] }
  0x10   : > { %p1152_p3 = pnand %p730_p0, %p220_p2  ;;  %s233_s11 = sshll.u32 %s1077_s10, 4  ;;  %s234_s11 = int_to_ptr.vmem [resolvable:$true] %s233_s11 }
  0x11   : > { %s1372_s5 = sld [smem:[#allocation21_spill]]  ;;  %s1078_s19 = smov [#allocation8]  }
  0x12   : > { %p771_p4 = pneg %p1152_p3  ;;  %s247_s20 = sshll.u32 %s1078_s19, 4  ;;  %s248_s20 = int_to_ptr.vmem [resolvable:$true] %s247_s20 }
  0x13   : > { %s231_s30 = sshll.u32 %s1368_s3, 4  ;;  %s1361_s21 = smov 128   ;;  %s232_s30 = int_to_ptr.hbm [resolvable:$true] %s231_s30 }
  0x14   : > { %p1164_p6 = pnand %p771_p4, %p74_p1  ;;  %s1362_s22 = smov 8  }
  0x15   : > { %s245_s14 = sshll.u32 %s1370_s4, 4  ;;  %s1081_s23 = smov [#allocation10]   ;;  %s246_s14 = int_to_ptr.hbm [resolvable:$true] %s245_s14 }
  0x16   : > { %774 = dma.hbm_to_vmem [thread:$0]  (!%p1164_p6), %s232_s30, 2048, %s234_s11, [#allocation6], %s1361_s21, %s1361_s21, %s1362_s22  }
  0x17   : > { %s259_s18 = sshll.u32 %s1372_s5, 4  ;;  %s261_s28 = sshll.u32 %s1081_s23, 4  ;;  %s260_s18 = int_to_ptr.hbm [resolvable:$true] %s259_s18  ;;  %s262_s28 = int_to_ptr.vmem [resolvable:$true] %s261_s28 }
  0x18   : > { %777 = dma.hbm_to_vmem [thread:$0]  (!%p1164_p6), %s246_s14, 2048, %s248_s20, [#allocation9], %s1361_s21, %s1361_s21, %s1362_s22  }
  0x19   : > { %780 = dma.hbm_to_vmem [thread:$0]  (!%p1164_p6), %s260_s18, 2048, %s262_s28, [#allocation9], %s1361_s21, %s1361_s21, %s1362_s22  }
  0x1a   : > { %s729_s29 = sadd.s32 4294967294, %s1075_s27   ;;  %s1188_s30 = sadd.s32 1, %s1075_s27  }
  0x1b   : > { %s60_s10 = sadd.s32 1, %s1071_s26  ;;  %s57_s11 = ssub.s32 %s1075_s27, %s1188_s30 }
  0x1c   : > { %p67_p7 = scmp.ne.s32.totalorder %s1071_s26, %s1067_s25  ;;  %p58_p8 = scmp.eq.s32.totalorder %s57_s11, 0 }
  0x1d   : > { %p68_p9 = scmp.eq.s32.totalorder %s1075_s27, 0  ;;  %p73_p10 = scmp.ne.s32.totalorder %s1067_s25, %s1063_s24 }
  0x1e   : > { %p207_p11 = scmp.eq.s32.totalorder %s1147_s8, 1  ;;  %p213_p2 = scmp.eq.s32.totalorder %s729_s29, 1 }
  0x1f   : > { %s1200_s12 = scalar_select %p58_p8, %s1071_s26, %s60_s10  }
  0x20   : > { %p1202_p12 = por %p68_p9, %p67_p7  ;;  %p1208_p13 = por %p74_p1, %p73_p10 }
  0x21   : > { %1373 = sst [smem:[#allocation18_spill]] %s1200_s12  ;;  %p1212_p0 = por %p207_p11, %p67_p7 }
  0x22   : > { %p795_p4 = scmp.lt.s32.totalorder %s1075_s27, 2  ;;  %s1218_s16 = sand.u32 1, %s1071_s26  }
  0x23   : > { %p1220_p6 = por %p213_p2, %p73_p10  ;;  %s735_s18 = sshll.u32 %s1218_s16, 3 }
  0x24   : > { %s736_s19 = sshll.u32 %s1075_s27, 3  ;;  %s288_s11 = scalar_lea.vmem [#allocation2], %s735_s18 }
  0x25   : > { %s292_s28 = scalar_lea.hbm %s1354_s1, %s736_s19  ;;  %s296_s21 = sshll.u32 %s288_s11, 4  ;;  %s297_s21 = int_to_ptr.vmem [resolvable:$true] %s296_s21 }
  0x26   : > { %s294_s10 = sshll.u32 %s292_s28, 4  ;;  %p1231_p7 = pnand %p795_p4, %p1202_p12  ;;  %s295_s10 = int_to_ptr.hbm [resolvable:$true] %s294_s10 }
  0x27   : > { %s737_s22 = sshll.u32 %s1218_s16, 4  ;;  %s303_s3 = sand.u32 1, %s1075_s27  }
  0x28   : > { %s307_s4 = scalar_lea.vmem [#allocation5], %s737_s22  ;;  %s285_s12 = scalar_lea.sflag [#allocation3], %s1218_s16 }
  0x29   : > { %s315_s5 = sshll.u32 %s307_s4, 4  ;;  %s937_s26 = sshra.s32 %s295_s10, 4  ;;  %s938_s26 = int_to_ptr.hbm [resolvable:$true] %s937_s26  ;;  %s316_s5 = int_to_ptr.vmem [resolvable:$true] %s315_s5 }
  0x2a   : > { %s939_s19 = scalar_lea.hbm %s938_s26, 8  ;;  %p941_p9 = pneg %p1231_p7 }
  0x2b   : > { %p940_p8 = scmp.ne.s32.totalorder %s938_s26, %s939_s19  ;;  %s944_s20 = scalar_lea.hbm %s1354_s1, 16 }
  0x2c   : > { %p945_p12 = scmp.lt.s32.totalorder %s938_s26, %s1354_s1  ;;  %p946_p2 = scmp.lt.s32.totalorder %s944_s20, %s939_s19 }
  0x2d   : > { %p942_p10 = pnand %p941_p9, %p940_p8 }
  0x2e   : > { %p947_p4 = por %p946_p2, %p945_p12 }
  0x2f   : > { %p943_p11 = pneg %p942_p10 }
  0x31   : > { %p948_p5 = pnand %p947_p4, %p943_p11 }
  0x33   : > { %951 = shalt.err (!%p948_p5)
}
  0x34   : > { %784 = dma.hbm_to_vmem [thread:$0]  (!%p1231_p7), %s295_s10, 128, %s297_s21, %s285_s12  }
  0x35   : > { %s752_s4 = sshll.u32 %s1075_s27, 4  ;;  %s304_s18 = scalar_lea.sflag [#allocation6], %s303_s3 }
  0x36   : > { %s312_s11 = scalar_lea.hbm %s1355_s2, %s752_s4  ;;  %s974_s21 = scalar_lea.hbm %s1355_s2, 32 }
  0x37   : > { %s313_s13 = sshll.u32 %s312_s11, 4  ;;  %s314_s13 = int_to_ptr.hbm [resolvable:$true] %s313_s13 }
  0x38   : > { %s967_s23 = sshra.s32 %s314_s13, 4  ;;  %s968_s23 = int_to_ptr.hbm [resolvable:$true] %s967_s23 }
  0x39   : > { %s969_s26 = scalar_lea.hbm %s968_s23, 16  ;;  %p975_p11 = scmp.lt.s32.totalorder %s968_s23, %s1355_s2 }
  0x3a   : > { %p970_p8 = scmp.ne.s32.totalorder %s968_s23, %s969_s26  ;;  %p976_p12 = scmp.lt.s32.totalorder %s974_s21, %s969_s26 }
  0x3c   : > { %p972_p5 = pnand %p970_p8, %p941_p9  ;;  %p977_p2 = por %p976_p12, %p975_p11 }
  0x3e   : > { %p973_p10 = pneg %p972_p5 }
  0x40   : > { %p978_p4 = pnand %p977_p2, %p973_p10 }
  0x42   : > { %981 = shalt.err (!%p978_p4)
}
  0x43   : > { %s1379_s3 = smov 8   ;;  %s1380_s28 = smov 128  }
  0x44   : > { %787 = dma.hbm_to_vmem [thread:$0]  (!%p1231_p7), %s314_s13, 256, %s316_s5, %s304_s18, %s1380_s28, %s1380_s28, %s1379_s3  }
  0x45   : > { %327 = sbr.rel (%p1152_p3) target bundleno = 893 (0x37d), region = 48  ;;  %s1272_s4 = sand.u32 (!%p1152_p3), 1, %s1067_s25  }
  0x46   : > { %s741_s22 = sshll.u32 (!%p1152_p3), %s1272_s4, 3  ;;  %s330_s16 = scalar_lea.sflag (!%p1152_p3), [#allocation3], %s1272_s4 }
  0x47   : > { %s1278_s11 = scalar_lea.vmem (!%p1152_p3), [#allocation2], %s741_s22 }
  0x4a   : > { %1042 = dma.done.wait (%p1208_p13), %s330_s16, 128  }
  0x4b   : > { %1044 = vsyncadd (%p1208_p13), %s330_s16, 4294967168  ;;  %s339_s5 = sand.u32 1, %s1147_s8   ;;  %s742_s9 = sshll.u32 %s1272_s4, 4 }
  0x4c   : > { %s340_s29 = scalar_lea.sflag [#allocation6], %s339_s5  ;;  %s343_s13 = scalar_lea.vmem [#allocation5], %s742_s9 }
  0x4d   : > { %1046 = dma.done.wait (%p1208_p13), %s340_s29, 256  }
  0x4e   : > { %1048 = vsyncadd (%p1208_p13), %s340_s29, 4294967040 }
  0x4f   : > { %1050 = dma.done.wait (%p74_p1), [#allocation6], 2048  }
  0x50   : > { %1052 = vsyncadd (%p74_p1), [#allocation6], 4294965248 }
  0x51   : > { %1054 = dma.done.wait (%p74_p1), [#allocation9], 4096  }
  0x52   : > { %1056 = vsyncadd (%p74_p1), [#allocation9], 4294963200  ;;  %v419_v0 = vld [vmem:[#allocation7 + $0x78] sm:$0xff]  ;;  %v418_v1 = vld [vmem:[#allocation7 + $0x70] sm:$0xff]  ;;  %p398_p1 = scmp.lt.s32.totalorder %s1147_s8, 1  ;;  %v1082_v20 = vmov 0   ;;  %v461_v22 = vlaneseq }
  0x53   : > { %420 = vmatpush.msra.mxu0 %v419_v0  ;;  %v417_v2 = vld [vmem:[#allocation7 + $0x68] sm:$0xff]  ;;  %v416_v3 = vld [vmem:[#allocation7 + $0x60] sm:$0xff]  ;;  %v415_v5 = vld [vmem:[#allocation7 + $0x58] sm:$0xff]  ;;  %838 = vset.pattern.permute.xlu0 %v1082_v20  ;;  %vm469_vm1 = vcmask 130048   ;;  %s749_s21 = sshll.u32 %s1147_s8, 3  ;;  %s397_s28 = scalar_lea.vmem [#allocation11], %s741_s22 }
  0x54   : > { %v403_v4 = vld [vmem:[%s343_s13 + $0x8] sm:$0xff]  ;;  %v402_v6 = vld [vmem:[%s343_s13] sm:$0xff]  ;;  %s399_s14 = scalar_select %p398_p1, %s1147_s8, 1  ;;  %v462_v23 = vand.u32 127, %v461_v22 }
  0x55   : > { %421 = vmatpush.msra.mxu0 %v418_v1  ;;  %454 = vmatpush.xpose.msra.mxu1 %v403_v4  ;;  %v414_v7 = vld [vmem:[#allocation7 + $0x50] sm:$0xff]  ;;  %v413_v8 = vld [vmem:[#allocation7 + $0x48] sm:$0xff]  ;;  %v412_v9 = vld [vmem:[#allocation7 + $0x40] sm:$0xff]  ;;  %s594_s3 = scalar_lea.hbm %s1360_s7, %s749_s21  ;;  %s596_s16 = sshll.u32 %s397_s28, 4  ;;  %s597_s16 = int_to_ptr.vmem [resolvable:$true] %s596_s16 }
  0x56   : > { %v411_v10 = vld [vmem:[#allocation7 + $0x38] sm:$0xff]  ;;  %v410_v11 = vld [vmem:[#allocation7 + $0x30] sm:$0xff]  ;;  %v409_v12 = vld [vmem:[#allocation7 + $0x28] sm:$0xff]  ;;  %s400_s26 = scalar_lea.vmem %s1353_s0, %s399_s14  ;;  %s584_s5 = scalar_lea.sflag [#allocation4], %s1272_s4 }
  0x57   : > { %422 = vmatpush.msra.mxu0 %v417_v2  ;;  %v408_v13 = vld [vmem:[#allocation7 + $0x20] sm:$0xff]  ;;  %v407_v14 = vld [vmem:[#allocation7 + $0x18] sm:$0xff]  ;;  %v406_v15 = vld [vmem:[#allocation7 + $0x10] sm:$0xff]  ;;  %s1017_s14 = scalar_lea.hbm %s1360_s7, 16 }
  0x58   : > { %v405_v16 = vld [vmem:[#allocation7 + $0x8] sm:$0xff]  ;;  %v404_v17 = vld [vmem:[#allocation7] sm:$0xff]  ;;  %v1299_v18 = vld [vmem:[%s1278_s11] sm:$0xff]  ;;  %s598_s11 = sshll.u32 %s594_s3, 4  ;;  %s599_s11 = int_to_ptr.hbm [resolvable:$true] %s598_s11 }
  0x59   : > { %423 = vmatpush.msra.mxu0 %v416_v3  ;;  %455 = vmatpush.xpose.msra.mxu1 %v402_v6  ;;  %v839_v19 = vld [vmem:[%s400_s26] ss:$0 sm:$0xff]  ;;  %v535_v33 = vld [vmem:[#allocation10 + $0x78] sm:$0xff]  ;;  %v533_v37 = vld [vmem:[#allocation10 + $0x68] sm:$0xff]  ;;  %s1011_s9 = sshra.s32 %s599_s11, 4  ;;  %s1012_s9 = int_to_ptr.hbm [resolvable:$true] %s1011_s9 }
  0x5a   : > { %465 = vperm.xlu0 %838, %v839_v19   ;;  %v519_v34 = vld [vmem:[#allocation8 + $0x78] sm:$0xff]  ;;  %v534_v35 = vld [vmem:[#allocation10 + $0x70] sm:$0xff]  ;;  %536 = vmatpush.msra.mxu3 %v535_v33  ;;  %v517_v38 = vld [vmem:[#allocation8 + $0x68] sm:$0xff]  ;;  %s1013_s29 = scalar_lea.hbm %s1012_s9, 8  ;;  %p1018_p9 = scmp.lt.s32.totalorder %s1012_s9, %s1360_s7 }
  0x5b   : > { %424 = vmatpush.msra.mxu0 %v415_v5  ;;  %556 = vmatpush.msra.mxu2 %v519_v34  ;;  %v518_v36 = vld [vmem:[#allocation8 + $0x70] sm:$0xff]  ;;  %v532_v39 = vld [vmem:[#allocation10 + $0x60] sm:$0xff]  ;;  %v531_v41 = vld [vmem:[#allocation10 + $0x58] sm:$0xff]  ;;  %p1014_p3 = scmp.ne.s32.totalorder %s1012_s9, %s1013_s29  ;;  %p1019_p8 = scmp.lt.s32.totalorder %s1017_s14, %s1013_s29 }
  0x5c   : > { %537 = vmatpush.msra.mxu3 %v534_v35  ;;  %v516_v40 = vld [vmem:[#allocation8 + $0x60] sm:$0xff]  ;;  %v515_v42 = vld [vmem:[#allocation8 + $0x58] sm:$0xff]  ;;  %v530_v43 = vld [vmem:[#allocation10 + $0x50] sm:$0xff] }
  0x5d   : > { %425 = vmatpush.msra.mxu0 %v414_v7  ;;  %498 = vmatpush.msrb.mxu1 %v403_v4  ;;  %v514_v44 = vld [vmem:[#allocation8 + $0x50] sm:$0xff]  ;;  %v529_v45 = vld [vmem:[#allocation10 + $0x48] sm:$0xff]  ;;  %v528_v47 = vld [vmem:[#allocation10 + $0x40] sm:$0xff]  ;;  %p1015_p13 = pnand %p1014_p3, %p1212_p0  ;;  %p1020_p5 = por %p1019_p8, %p1018_p9 }
  0x5e   : > { %557 = vmatpush.msra.mxu2 %v518_v36  ;;  %538 = vmatpush.msra.mxu3 %v533_v37  ;;  %v513_v46 = vld [vmem:[#allocation8 + $0x48] sm:$0xff]  ;;  %v512_v48 = vld [vmem:[#allocation8 + $0x40] sm:$0xff]  ;;  %v527_v49 = vld [vmem:[#allocation10 + $0x38] sm:$0xff] }
  0x5f   : > { %426 = vmatpush.msra.mxu0 %v413_v8  ;;  %499 = vmatpush.msrb.mxu1 %v402_v6  ;;  %v511_v50 = vld [vmem:[#allocation8 + $0x38] sm:$0xff]  ;;  %v526_v51 = vld [vmem:[#allocation10 + $0x30] sm:$0xff]  ;;  %v525_v53 = vld [vmem:[#allocation10 + $0x28] sm:$0xff]  ;;  %p1016_p7 = pneg %p1015_p13 }
  0x60   : > { %558 = vmatpush.msra.mxu2 %v517_v38  ;;  %539 = vmatpush.msra.mxu3 %v532_v39  ;;  %v510_v52 = vld [vmem:[#allocation8 + $0x30] sm:$0xff]  ;;  %v509_v54 = vld [vmem:[#allocation8 + $0x28] sm:$0xff]  ;;  %v524_v55 = vld [vmem:[#allocation10 + $0x20] sm:$0xff] }
  0x61   : > { %427 = vmatpush.msra.mxu0 %v412_v9  ;;  %v508_v56 = vld [vmem:[#allocation8 + $0x20] sm:$0xff]  ;;  %v523_v58 = vld [vmem:[#allocation10 + $0x18] sm:$0xff]  ;;  %v522_v60 = vld [vmem:[#allocation10 + $0x10] sm:$0xff]  ;;  %p1021_p10 = pnand %p1020_p5, %p1016_p7 }
  0x62   : > { %559 = vmatpush.msra.mxu2 %v516_v40  ;;  %540 = vmatpush.msra.mxu3 %v531_v41  ;;  %v507_v59 = vld [vmem:[#allocation8 + $0x18] sm:$0xff]  ;;  %v506_v61 = vld [vmem:[#allocation8 + $0x10] sm:$0xff]  ;;  %v521_v62 = vld [vmem:[#allocation10 + $0x8] sm:$0xff] }
  0x63   : > { %428 = vmatpush.msra.mxu0 %v411_v10  ;;  %v505_v63 = vld [vmem:[#allocation8 + $0x8] sm:$0xff]  ;;  %v520_v2 = vld [vmem:[#allocation10] sm:$0xff]  ;;  %v840_v6 = vld [vmem:[%s1359_s6] ss:$0 sm:$0xff] }
  0x64   : > { %560 = vmatpush.msra.mxu2 %v515_v42  ;;  %541 = vmatpush.msra.mxu3 %v530_v43  ;;  %v504_v3 = vld [vmem:[#allocation8] sm:$0xff] }
  0x65   : > { %429 = vmatpush.msra.mxu0 %v410_v11 }
  0x66   : > { %561 = vmatpush.msra.mxu2 %v514_v44  ;;  %542 = vmatpush.msra.mxu3 %v529_v45 }
  0x67   : > { %430 = vmatpush.msra.mxu0 %v409_v12 }
  0x68   : > { %562 = vmatpush.msra.mxu2 %v513_v46  ;;  %543 = vmatpush.msra.mxu3 %v528_v47 }
  0x69   : > { %431 = vmatpush.msra.mxu0 %v408_v13 }
  0x6a   : > { %563 = vmatpush.msra.mxu2 %v512_v48  ;;  %544 = vmatpush.msra.mxu3 %v527_v49 }
  0x6b   : > { %432 = vmatpush.msra.mxu0 %v407_v14 }
  0x6c   : > { %564 = vmatpush.msra.mxu2 %v511_v50  ;;  %545 = vmatpush.msra.mxu3 %v526_v51 }
  0x6d   : > { %433 = vmatpush.msra.mxu0 %v406_v15 }
  0x6e   : > { %565 = vmatpush.msra.mxu2 %v510_v52  ;;  %546 = vmatpush.msra.mxu3 %v525_v53 }
  0x6f   : > { %434 = vmatpush.msra.mxu0 %v405_v16 }
  0x70   : > { %566 = vmatpush.msra.mxu2 %v509_v54  ;;  %547 = vmatpush.msra.mxu3 %v524_v55 }
  0x71   : > { %435 = vmatpush.msra.mxu0 %v404_v17 }
  0x72   : > { %436 = vmatmul.f32.vlgmr.msra.gmra.mxu0 %v1299_v18  ;;  %567 = vmatpush.msra.mxu2 %v508_v56 }
  0x73   : > { %548 = vmatpush.msra.mxu3 %v523_v58 }
  0x74   : > { %568 = vmatpush.msra.mxu2 %v507_v59 }
  0x75   : > { %549 = vmatpush.msra.mxu3 %v522_v60 }
  0x76   : > { %569 = vmatpush.msra.mxu2 %v506_v61 }
  0x77   : > { %550 = vmatpush.msra.mxu3 %v521_v62 }
  0x78   : > { %570 = vmatpush.msra.mxu2 %v505_v63 }
  0x79   : > { %551 = vmatpush.msra.mxu3 %v520_v2 }
  0x7a   : > { %571 = vmatpush.msra.mxu2 %v504_v3  ;;  %552 = vmatmul.f32.vlgmr.msra.gmra.mxu3 %v1299_v18 }
  0xcc   : > { %v466_v24 = vpop.permute.xlu0 %465 }
  0xcd   : > { %vm467_vm0 = vcmp.lt.s32.totalorder %v462_v23, %v466_v24 }
  0xef   : > { %v437_v21 = vpop.f32.mrf.mxu0 }
  0xf0   : > { %456 = vmatmul.f32.vlgmr.msra.gmra.mxu1 %v437_v21 }
  0xfd   : > { %v553_v5 = vpop.f32.mrf.mxu3 }
 0x16d   : > { %v457_v25 = vpop.f32.mrf.mxu1 }
 0x16e   : > { %v468_v26 = vsel %vm467_vm0, %v457_v25, -1e+30 }
 0x16f   : > { %v470_v27 = vsel %vm469_vm1, %v468_v26, -inf }
 0x170   : > { %471 = vmax.xlane.f32.xlu0 %v470_v27 }
 0x1e3   : > { %v472_v28 = vpop.xlane.xlu0 %471 }
 0x1e4   : > { %v473_v29 = vsub.f32 %v468_v26, %v472_v28 }
 0x1e6   : > { %v474_v30 = vmul.f32 1.442695, %v473_v29 }
 0x1e8   : > { %841 = vpow2.f32 %v474_v30 }
 0x1ee   : > { %v1308_v31 = vpop.eup %841 }
 0x1ef   : > { %v476_v32 = vsel %vm469_vm1, %v1308_v31, 0.0 }
 0x1f0   : > { %477 = vadd.xlane.f32.xlu1 %v476_v32 }
 0x263   : > { %v478_v57 = vpop.xlane.xlu1 %477 }
 0x264   : > { %843 = vrcp.f32 %v478_v57 }
 0x26a   : > { %v844_v0 = vpop.eup %843 }
 0x26b   : > { %v480_v1 = vmul.f32 %v844_v0, %v1308_v31 }
 0x26d   : > { %747 = vmatmul.msk.f32.vlgmr.msrb.gmra.mxu1 %vm469_vm1, %v480_v1 }
 0x2ea   : > { %v501_v4 = vpop.f32.mrf.mxu1 }
 0x2eb   : > { %572 = vmatmul.f32.vlgmr.msra.gmra.mxu2 %v501_v4 }
 0x36e   : > { %v573_v7 = vpop.f32.mrf.mxu2 }
 0x36f   : > { %v574_v8 = vadd.f32 %v573_v7, %v553_v5 }
 0x371   : > { %v580_v9 = vadd.f32 %v840_v6, %v574_v8 }
 0x373   : > { %845 = vtanh.f32 %v580_v9 }
 0x379   : > { %v846_v10 = vpop.eup %845 }
 0x37a   : > { %582 = vst [vmem:[%s397_s28] sm:$0xff] %v846_v10 }
 0x37b   : > { %1024 = shalt.err (!%p1021_p10)
}
 0x37c   : > { %769 = dma.vmem_to_hbm [thread:$0]  (%p1212_p0), %s597_s16, 128, %s599_s11, %s584_s5  }
 0x37d PF: > { %s610_s4 = sand.u32 1, %s1063_s24   ;;  %p1381_p11 = scmp.ge.s32.totalorder %s1075_s27, 2 }
 0x37e   : > { %s611_s23 = scalar_lea.sflag [#allocation4], %s610_s4 }
 0x37f   : > { %p789_p12 = pnand %p1381_p11, %p1220_p6 }
 0x381   : > { %p790_p2 = pneg %p789_p12 }
 0x383   : > { %1058 = dma.done.wait (%p790_p2), %s611_s23, 128  }
 0x384   : > { %1060 = vsyncadd (%p790_p2), %s611_s23, 4294967168  ;;  %s1382_s26 = sld [smem:[#allocation17_spill]]  ;;  %p24_p4 = scmp.ge.s32.totalorder %s1188_s30, 4  }
 0x385   : > { %s1383_s19 = sld [smem:[#allocation18_spill]]  ;;  %s1384_s24 = smov %s1067_s25 }
 0x386   : > { %s1387_s27 = smov %s1188_s30 }
 0x387   :  { %26 = sbr.rel (!%p24_p4) target bundleno = 12 (0xc), region = 121 }
 0x38a   : > { %s1385_s25 = smov %s1382_s26 }
 0x38b   : > { %s1386_s26 = smov %s1383_s19 }
 0x38c   :  { %617 = vsyncpa [#allocation3], 1 }
 0x38d   :  { %619 = vsyncpa [#allocation3 + $0x1], 1 }
 0x38e   :  { %620 = vsyncpa [#allocation6], 1 }
 0x38f   :  { %622 = vsyncpa [#allocation6 + $0x1], 1 }
 0x390   :  { %623 = vsyncpa [#allocation9], 1 }
 0x391   :  { %624 = vsyncpa [#allocation4], 1 }
 0x392   :  { %626 = vsyncpa [#allocation4 + $0x1], 1 }

</bundles_post_ra>
